<compile_context>
chip_gen: v6e
topology: v6e:2x2x1
jax: 0.10.0
libtpu: 0.0.40
codegen_flags: <defaults>
</compile_context>

<pallas_src>
import math
import jax
import jax.numpy as jnp
from jax.experimental import pallas as pl
from jax.experimental.pallas import tpu as pltpu

IN_FEATURES = 28 * 28          # 784 (full last dim of x -> no 128-padding needed)
H1 = 128
H2 = 64
H2_PAD = 128                   # 64 padded to 128 lanes (zero cols)
NUM_CLASSES = 10
OUT_PAD = 128                  # 10 padded to 128 lanes for the in-kernel softmax
NEG_INF = float("-inf")


def _round_up(x, m):
    return (x + m - 1) // m * m


def _mlp_kernel(x_ref, w1_ref, b1_ref, w2_ref, b2_ref, w3_ref, b3_ref, o_ref):
    # x_ref: (TM, 784) f32; weights bf16; biases f32; o_ref: (TM, 10) f32.
    x = x_ref[...].astype(jnp.bfloat16)                              # in-kernel cast (VPU, free)

    h1 = jnp.dot(x, w1_ref[...],
                 preferred_element_type=jnp.float32) + b1_ref[...]
    h1 = jnp.maximum(h1, 0.0).astype(jnp.bfloat16)                   # (TM, 128)

    h2 = jnp.dot(h1, w2_ref[...],
                 preferred_element_type=jnp.float32) + b2_ref[...]
    h2 = jnp.maximum(h2, 0.0).astype(jnp.bfloat16)                   # (TM, 128); cols 64.. are 0

    logits = jnp.dot(h2, w3_ref[...],
                     preferred_element_type=jnp.float32) + b3_ref[...]  # (TM, 128)

    # Columns 10..127 carry a -inf bias => exp() contributes exactly 0, so this
    # 128-lane log_softmax equals the 10-class log_softmax (numerically stable).
    m = jnp.max(logits, axis=-1, keepdims=True)
    shifted = logits - m
    lse = jnp.log(jnp.sum(jnp.exp(shifted), axis=-1, keepdims=True))
    o_ref[...] = (shifted - lse)[:, :NUM_CLASSES]                    # store only real lanes


def _pack_params(params):
    """Cast/pad raw (in,out)-layout params to the lane-dense bf16/f32 kernel layout."""
    w1, b1, w2, b2, w3, b3 = params
    # fc1: (784, 128) as-is.
    w1p = w1.astype(jnp.bfloat16)
    b1p = b1.reshape(1, H1).astype(jnp.float32)
    # fc2: pad N 64 -> 128 with zero cols; zero bias pad => padded h2 cols are relu(0)=0.
    w2p = jnp.zeros((H1, H2_PAD), jnp.float32).at[:, :H2].set(w2).astype(jnp.bfloat16)
    b2p = jnp.zeros((1, H2_PAD), jnp.float32).at[:, :H2].set(b2.reshape(1, H2))
    # fc3: pad K 64 -> 128 with zero rows, N 10 -> 128 with zero cols and -inf bias.
    w3p = (jnp.zeros((H2_PAD, OUT_PAD), jnp.float32)
           .at[:H2, :NUM_CLASSES].set(w3).astype(jnp.bfloat16))
    b3p = jnp.full((1, OUT_PAD), NEG_INF, jnp.float32).at[:, :NUM_CLASSES].set(
        b3.reshape(1, NUM_CLASSES))
    return w1p, b1p, w2p, b2p, w3p, b3p


def mnist_forward(image, params, *, tm=1024):
    """image: (B, 1, 28, 28) float (NCHW). Returns (log_probs (B, 10), {})."""
    B = image.shape[0]
    x = image.reshape(B, IN_FEATURES).astype(jnp.float32)   # nn.Flatten (row-major, no HBM pass)

    # Batch tile selection:
    #  - multiple of 16 (bf16 sublane packing of the in-kernel cast), never over-pad tiny batches
    #  - keep >= 2 grid steps once the batch is big enough so v7x's two TensorCores both
    #    get work ("parallel" axis is sharded across TCs; a no-op on single-TC v5e/v6e).
    bp0 = _round_up(B, 16)
    tm = min(tm, bp0)
    if bp0 // tm < 2 and bp0 > 256:
        tm = _round_up(pl.cdiv(bp0, 2), 16)
    bp = _round_up(B, tm)
    if bp != B:
        x = jnp.pad(x, ((0, bp - B), (0, 0)))               # row-only pad; skipped if B % tm == 0

    w1p, b1p, w2p, b2p, w3p, b3p = _pack_params(params)

    const = lambda i: (0, 0)       # weights/biases: resident in VMEM, never re-DMA'd
    out = pl.pallas_call(
        _mlp_kernel,
        out_shape=jax.ShapeDtypeStruct((bp, NUM_CLASSES), jnp.float32),
        grid=(bp // tm,),
        in_specs=[
            pl.BlockSpec((tm, IN_FEATURES), lambda i: (i, 0)),   # x: streamed f32, full 784 lanes
            pl.BlockSpec((IN_FEATURES, H1), const),
            pl.BlockSpec((1, H1), const),
            pl.BlockSpec((H1, H2_PAD), const),
            pl.BlockSpec((1, H2_PAD), const),
            pl.BlockSpec((H2_PAD, OUT_PAD), const),
            pl.BlockSpec((1, OUT_PAD), const),
        ],
        out_specs=pl.BlockSpec((tm, NUM_CLASSES), lambda i: (i, 0)),
        compiler_params=pltpu.CompilerParams(
            dimension_semantics=("parallel",),                   # megacore batch split (v7x)
        ),
    )(x, w1p, b1p, w2p, b2p, w3p, b3p)

    log_probs = out if bp == B else out[:B]
    return log_probs, {}
    # TODO(synk): optional NLLLoss (target path) is left to the surrounding JAX graph
    # (or scalar-prefetch the labels and emit per-row picked log-probs in-kernel).


# ------------------------- init + test harness -------------------------------

def _xavier_uniform(key, fan_in, fan_out):
    # matches torch.nn.init.xavier_uniform_ (gain=1): U(-a, a), a = sqrt(6/(fan_in+fan_out))
    a = math.sqrt(6.0 / (fan_in + fan_out))
    return jax.random.uniform(key, (fan_in, fan_out), jnp.float32, minval=-a, maxval=a)


def init_params(key):
    k1, k2, k3 = jax.random.split(key, 3)
    w1 = _xavier_uniform(k1, IN_FEATURES, H1)
    b1 = jnp.zeros((H1,), jnp.float32)
    w2 = _xavier_uniform(k2, H1, H2)
    b2 = jnp.zeros((H2,), jnp.float32)
    w3 = _xavier_uniform(k3, H2, NUM_CLASSES)
    b3 = jnp.zeros((NUM_CLASSES,), jnp.float32)
    return (w1, b1, w2, b2, w3, b3)


def _reference(image, params):
    w1, b1, w2, b2, w3, b3 = params
    x = image.reshape(image.shape[0], -1).astype(jnp.float32)
    h1 = jnp.maximum(x @ w1 + b1.reshape(1, -1), 0.0)
    h2 = jnp.maximum(h1 @ w2 + b2.reshape(1, -1), 0.0)
    logits = h2 @ w3 + b3.reshape(1, -1)
    return jax.nn.log_softmax(logits, axis=-1)


if __name__ == "__main__":
    key = jax.random.PRNGKey(0)
    pkey, xkey = jax.random.split(key)
    params = init_params(pkey)

    # Small deterministic batch of "MNIST" images, NCHW like PyTorch.
    image = jax.random.normal(xkey, (8, 1, 28, 28), jnp.float32)

    log_probs, extras = mnist_forward(image, params)
    log_probs = jax.block_until_ready(log_probs)

    assert log_probs.shape == (8, NUM_CLASSES)
    # log_softmax rows must sum (in prob space) to ~1
    assert jnp.allclose(jnp.exp(log_probs).sum(axis=1), 1.0, atol=1e-4)
    # loose check vs f32 reference (kernel uses bf16 MXU inputs, f32 accumulation)
    ref = _reference(image, params)
    assert jnp.allclose(log_probs, ref, atol=5e-2), float(jnp.abs(log_probs - ref).max())
    print("KERNEL_OK")
</pallas_src>

<mosaic_0001>
module attributes {stable_mosaic.version = 11 : i64} {
  func.func @_mlp_kernel(%arg0: i32, %arg1: memref<16x784xf32, #tpu.memory_space<vmem>>, %arg2: memref<784x128xbf16, #tpu.memory_space<vmem>>, %arg3: memref<1x128xf32, #tpu.memory_space<vmem>>, %arg4: memref<128x128xbf16, #tpu.memory_space<vmem>>, %arg5: memref<1x128xf32, #tpu.memory_space<vmem>>, %arg6: memref<128x128xbf16, #tpu.memory_space<vmem>>, %arg7: memref<1x128xf32, #tpu.memory_space<vmem>>, %arg8: memref<16x10xf32, #tpu.memory_space<vmem>>) attributes {dimension_semantics = [#tpu.dimension_semantics<parallel>], iteration_bounds = array<i64: 1>, scalar_prefetch = 0 : i64, scratch_operands = 0 : i64, tpu.core_type = #tpu.core_type<tc>, window_params = [{transform_indices = @transform_0, window_bounds = array<i64: 16, 784>}, {pipeline_mode = #tpu.pipeline_mode<synchronous>, transform_indices = @transform_1, window_bounds = array<i64: 784, 128>}, {pipeline_mode = #tpu.pipeline_mode<synchronous>, transform_indices = @transform_2, window_bounds = array<i64: 1, 128>}, {pipeline_mode = #tpu.pipeline_mode<synchronous>, transform_indices = @transform_3, window_bounds = array<i64: 128, 128>}, {pipeline_mode = #tpu.pipeline_mode<synchronous>, transform_indices = @transform_4, window_bounds = array<i64: 1, 128>}, {pipeline_mode = #tpu.pipeline_mode<synchronous>, transform_indices = @transform_5, window_bounds = array<i64: 128, 128>}, {pipeline_mode = #tpu.pipeline_mode<synchronous>, transform_indices = @transform_6, window_bounds = array<i64: 1, 128>}, {transform_indices = @transform_7, window_bounds = array<i64: 16, 10>}]} {
    %c0 = arith.constant 0 : index
    %c0_0 = arith.constant 0 : index
    %0 = vector.load %arg1[%c0, %c0_0] : memref<16x784xf32, #tpu.memory_space<vmem>>, vector<16x784xf32>
    %1 = arith.truncf %0 : vector<16x784xf32> to vector<16x784xbf16>
    %c0_1 = arith.constant 0 : index
    %c0_2 = arith.constant 0 : index
    %2 = vector.load %arg2[%c0_1, %c0_2] : memref<784x128xbf16, #tpu.memory_space<vmem>>, vector<784x128xbf16>
    %cst = arith.constant dense<0.000000e+00> : vector<16x128xf32>
    %3 = tpu.matmul %1, %2, %cst {dimension_numbers = #tpu.dot_dimension_numbers<[1], [0], [0], [1], [0, 0, 1, 1], [], []>} : vector<16x784xbf16>, vector<784x128xbf16>, vector<16x128xf32> -> vector<16x128xf32>
    %c0_3 = arith.constant 0 : index
    %c0_4 = arith.constant 0 : index
    %4 = vector.load %arg3[%c0_3, %c0_4] : memref<1x128xf32, #tpu.memory_space<vmem>>, vector<1x128xf32>
    %5 = vector.broadcast %4 : vector<1x128xf32> to vector<16x128xf32>
    %6 = arith.addf %3, %5 : vector<16x128xf32>
    %cst_5 = arith.constant 0.000000e+00 : f32
    %7 = vector.broadcast %cst_5 : f32 to vector<16x128xf32>
    %8 = arith.maximumf %6, %7 : vector<16x128xf32>
    %9 = arith.truncf %8 : vector<16x128xf32> to vector<16x128xbf16>
    %c0_6 = arith.constant 0 : index
    %c0_7 = arith.constant 0 : index
    %10 = vector.load %arg4[%c0_6, %c0_7] : memref<128x128xbf16, #tpu.memory_space<vmem>>, vector<128x128xbf16>
    %cst_8 = arith.constant dense<0.000000e+00> : vector<16x128xf32>
    %11 = tpu.matmul %9, %10, %cst_8 {dimension_numbers = #tpu.dot_dimension_numbers<[1], [0], [0], [1], [0, 0, 1, 1], [], []>} : vector<16x128xbf16>, vector<128x128xbf16>, vector<16x128xf32> -> vector<16x128xf32>
    %c0_9 = arith.constant 0 : index
    %c0_10 = arith.constant 0 : index
    %12 = vector.load %arg5[%c0_9, %c0_10] : memref<1x128xf32, #tpu.memory_space<vmem>>, vector<1x128xf32>
    %13 = vector.broadcast %12 : vector<1x128xf32> to vector<16x128xf32>
    %14 = arith.addf %11, %13 : vector<16x128xf32>
    %cst_11 = arith.constant 0.000000e+00 : f32
    %15 = vector.broadcast %cst_11 : f32 to vector<16x128xf32>
    %16 = arith.maximumf %14, %15 : vector<16x128xf32>
    %17 = arith.truncf %16 : vector<16x128xf32> to vector<16x128xbf16>
    %c0_12 = arith.constant 0 : index
    %c0_13 = arith.constant 0 : index
    %18 = vector.load %arg6[%c0_12, %c0_13] : memref<128x128xbf16, #tpu.memory_space<vmem>>, vector<128x128xbf16>
    %cst_14 = arith.constant dense<0.000000e+00> : vector<16x128xf32>
    %19 = tpu.matmul %17, %18, %cst_14 {dimension_numbers = #tpu.dot_dimension_numbers<[1], [0], [0], [1], [0, 0, 1, 1], [], []>} : vector<16x128xbf16>, vector<128x128xbf16>, vector<16x128xf32> -> vector<16x128xf32>
    %c0_15 = arith.constant 0 : index
    %c0_16 = arith.constant 0 : index
    %20 = vector.load %arg7[%c0_15, %c0_16] : memref<1x128xf32, #tpu.memory_space<vmem>>, vector<1x128xf32>
    %21 = vector.broadcast %20 : vector<1x128xf32> to vector<16x128xf32>
    %22 = arith.addf %19, %21 : vector<16x128xf32>
    %cst_17 = arith.constant dense<0xFF800000> : vector<16xf32>
    %23 = vector.multi_reduction <maximumf>, %22, %cst_17 [1] : vector<16x128xf32> to vector<16xf32>
    %24 = vector.shape_cast %23 : vector<16xf32> to vector<16x1xf32>
    %25 = vector.broadcast %24 : vector<16x1xf32> to vector<16x128xf32>
    %26 = arith.subf %22, %25 : vector<16x128xf32>
    %27 = math.exp %26 : vector<16x128xf32>
    %cst_18 = arith.constant dense<0.000000e+00> : vector<16xf32>
    %28 = vector.multi_reduction <add>, %27, %cst_18 [1] : vector<16x128xf32> to vector<16xf32>
    %29 = vector.shape_cast %28 : vector<16xf32> to vector<16x1xf32>
    %30 = math.log %29 : vector<16x1xf32>
    %31 = vector.broadcast %30 : vector<16x1xf32> to vector<16x128xf32>
    %32 = arith.subf %26, %31 : vector<16x128xf32>
    %33 = vector.extract_strided_slice %32 {offsets = [0, 0], sizes = [16, 10], strides = [1, 1]} : vector<16x128xf32> to vector<16x10xf32>
    %c0_19 = arith.constant 0 : index
    %c0_20 = arith.constant 0 : index
    %34 = vector.load %arg8[%c0_19, %c0_20] : memref<16x10xf32, #tpu.memory_space<vmem>>, vector<16x10xf32>
    tpu.vector_store %arg8[%c0_19, %c0_20], %33 {strides = array<i32>} : memref<16x10xf32, #tpu.memory_space<vmem>>, vector<16x10xf32>,
    return
  }
  func.func @transform_0(%arg0: i32) -> (i32, i32) {
    %c0_i32 = arith.constant 0 : i32
    %c0_i32_0 = arith.constant 0 : i32
    return %arg0, %c0_i32 : i32, i32
  }
  func.func @transform_1(%arg0: i32) -> (i32, i32) {
    %c0_i32 = arith.constant 0 : i32
    %c0_i32_0 = arith.constant 0 : i32
    %c0_i32_1 = arith.constant 0 : i32
    return %c0_i32, %c0_i32_0 : i32, i32
  }
  func.func @transform_2(%arg0: i32) -> (i32, i32) {
    %c0_i32 = arith.constant 0 : i32
    %c0_i32_0 = arith.constant 0 : i32
    %c0_i32_1 = arith.constant 0 : i32
    return %c0_i32, %c0_i32_0 : i32, i32
  }
  func.func @transform_3(%arg0: i32) -> (i32, i32) {
    %c0_i32 = arith.constant 0 : i32
    %c0_i32_0 = arith.constant 0 : i32
    %c0_i32_1 = arith.constant 0 : i32
    return %c0_i32, %c0_i32_0 : i32, i32
  }
  func.func @transform_4(%arg0: i32) -> (i32, i32) {
    %c0_i32 = arith.constant 0 : i32
    %c0_i32_0 = arith.constant 0 : i32
    %c0_i32_1 = arith.constant 0 : i32
    return %c0_i32, %c0_i32_0 : i32, i32
  }
  func.func @transform_5(%arg0: i32) -> (i32, i32) {
    %c0_i32 = arith.constant 0 : i32
    %c0_i32_0 = arith.constant 0 : i32
    %c0_i32_1 = arith.constant 0 : i32
    return %c0_i32, %c0_i32_0 : i32, i32
  }
  func.func @transform_6(%arg0: i32) -> (i32, i32) {
    %c0_i32 = arith.constant 0 : i32
    %c0_i32_0 = arith.constant 0 : i32
    %c0_i32_1 = arith.constant 0 : i32
    return %c0_i32, %c0_i32_0 : i32, i32
  }
  func.func @transform_7(%arg0: i32) -> (i32, i32) {
    %c0_i32 = arith.constant 0 : i32
    %c0_i32_0 = arith.constant 0 : i32
    return %arg0, %c0_i32 : i32, i32
  }
}

</mosaic_0001>

<bundles_post_ra>
// kernel: tpu_custom_call.1
= control target key start
LH: loop header
LB: loop body
LE: loop exit
PB: predicated region body
PF: predicated region fallthrough
CT: control target
= control target key end

     0   :  { %12 = vsyncpa [#allocation3], 0  ;;  %s1447_s0 = inlined_call_operand.hbm [shape: f32[16,784], index: 0, kind: input, shape index: {}]   ;;  %s1448_s1 = inlined_call_operand.hbm [shape: bf16[784,128], index: 1, kind: input, shape index: {}]   ;;  %s1449_s2 = inlined_call_operand.vmem [shape: f32[1,128], index: 2, kind: input, shape index: {}]   ;;  %s1450_s3 = inlined_call_operand.hbm [shape: bf16[128,128], index: 3, kind: input, shape index: {}]   ;;  %s1451_s4 = inlined_call_operand.vmem [shape: f32[1,128], index: 4, kind: input, shape index: {}]   ;;  %s1452_s5 = inlined_call_operand.hbm [shape: bf16[128,128], index: 5, kind: input, shape index: {}]   ;;  %s1453_s6 = inlined_call_operand.vmem [shape: f32[1,128], index: 6, kind: input, shape index: {}]   ;;  %s1454_s7 = inlined_call_operand.hbm [shape: f32[16,10], index: 7, kind: output, shape index: {}]  }
   0x1   :  { %13 = vsyncpa [#allocation6], 0 }
   0x2   :  { %14 = vsyncpa [#allocation9], 0 }
   0x3   :  { %15 = vsyncpa [#allocation4], 0  ;;  %s1338_s24 = smov [#allocation5]  }
   0x4   :  { %s33_s25 = sshll.u32 %s1338_s24, 4  ;;  %s34_s25 = int_to_ptr.vmem [resolvable:$true] %s33_s25 }
   0x5   :  { %s1238_s26 = scalar_lea.vmem %s34_s25, 6272  ;;  %p1243_p1 = scmp.lt.s32.totalorder %s34_s25, %s34_s25 }
   0x6   :  { %p1239_p0 = scmp.ne.s32.totalorder %s34_s25, %s1238_s26  ;;  %p1244_p2 = scmp.lt.s32.totalorder %s1238_s26, %s1238_s26 }
   0x8   :  { %p1245_p3 = por %p1244_p2, %p1243_p1 }
   0xa   :  { %p1246_p4 = pnand %p1245_p3, %p1239_p0 }
   0xc   :  { %1249 = shalt.err (!%p1246_p4)
}
   0xd   :  { %s1339_s27 = smov 64   ;;  %s1340_s28 = smov 4  }
   0xe   :  { %39 = dma.hbm_to_vmem [thread:$0]  %s1448_s1, 6272, %s34_s25, [#allocation6], %s1339_s27, %s1339_s27, %s1340_s28  }
   0xf   :  { %s1341_s8 = smov [#allocation2]  }
  0x10   :  { %s21_s9 = sshll.u32 %s1341_s8, 4  ;;  %s22_s9 = int_to_ptr.vmem [resolvable:$true] %s21_s9 }
  0x11   :  { %s1258_s10 = scalar_lea.vmem %s22_s9, 1792  ;;  %p1263_p6 = scmp.lt.s32.totalorder %s22_s9, %s22_s9 }
  0x12   :  { %p1259_p5 = scmp.ne.s32.totalorder %s22_s9, %s1258_s10  ;;  %p1264_p7 = scmp.lt.s32.totalorder %s1258_s10, %s1258_s10 }
  0x14   :  { %p1265_p8 = por %p1264_p7, %p1263_p6 }
  0x16   :  { %p1266_p9 = pnand %p1265_p8, %p1259_p5 }
  0x18   :  { %1269 = shalt.err (!%p1266_p9)
}
  0x19   :  { %s1342_s11 = smov 896   ;;  %s1343_s12 = smov 56  }
  0x1a   :  { %27 = dma.hbm_to_vmem [thread:$0]  %s1447_s0, 1792, %s22_s9, [#allocation3], %s1342_s11, %s1342_s11, %s1343_s12  }
  0x1b   :  { %s1344_s15 = smov [#allocation7]   ;;  %s1345_s17 = smov [#allocation8]  }
  0x1c   :  { %s47_s16 = sshll.u32 %s1344_s15, 4  ;;  %s61_s1 = sshll.u32 %s1345_s17, 4  ;;  %s48_s16 = int_to_ptr.vmem [resolvable:$true] %s47_s16  ;;  %s62_s1 = int_to_ptr.vmem [resolvable:$true] %s61_s1 }
  0x1d   :  { %s1278_s18 = scalar_lea.vmem %s48_s16, 1024  ;;  %p1283_p11 = scmp.lt.s32.totalorder %s48_s16, %s48_s16 }
  0x1e   :  { %p1279_p10 = scmp.ne.s32.totalorder %s48_s16, %s1278_s18  ;;  %p1284_p12 = scmp.lt.s32.totalorder %s1278_s18, %s1278_s18 }
  0x20   :  { %p1285_p13 = por %p1284_p12, %p1283_p11 }
  0x22   :  { %p1286_p0 = pnand %p1285_p13, %p1279_p10 }
  0x24   :  { %1289 = shalt.err (!%p1286_p0)
}
  0x25   :  { %53 = dma.hbm_to_vmem [thread:$0]  %s1450_s3, 1024, %s48_s16, [#allocation6], %s1339_s27, %s1339_s27, %s1340_s28  }
  0x26   :  { %s1298_s0 = scalar_lea.vmem %s62_s1, 1024  ;;  %p1303_p2 = scmp.lt.s32.totalorder %s62_s1, %s62_s1 }
  0x27   :  { %p1299_p1 = scmp.ne.s32.totalorder %s62_s1, %s1298_s0  ;;  %p1304_p3 = scmp.lt.s32.totalorder %s1298_s0, %s1298_s0 }
  0x29   :  { %p1305_p4 = por %p1304_p3, %p1303_p2 }
  0x2b   :  { %p1306_p5 = pnand %p1305_p4, %p1299_p1 }
  0x2d   :  { %1309 = shalt.err (!%p1306_p5)
}
  0x2e   :  { %67 = dma.hbm_to_vmem [thread:$0]  %s1452_s5, 1024, %s62_s1, [#allocation9], %s1339_s27, %s1339_s27, %s1340_s28  }
  0x2f   :  { %1330 = dma.done.wait [#allocation3], 1792  }
  0x30   :  { %1331 = vsyncadd [#allocation3], 4294965504 }
  0x31   :  { %1332 = dma.done.wait [#allocation6], 7296  }
  0x32   :  { %1333 = vsyncadd [#allocation6], 4294960000 }
  0x33   :  { %1334 = dma.done.wait [#allocation9], 1024  }
  0x34   :  { %1335 = vsyncadd [#allocation9], 4294966272  ;;  %v1157_v0 = vld [vmem:[#allocation5 + $0x78] sm:$0xff]   ;;  %v1161_v4 = vld [vmem:[#allocation5 + $0x70] sm:$0xff]   ;;  %v1346_v43 = vmov 0.0   ;;  %vm1347_vm0 = vmmov 0  }
  0x35   :  { %v1158_v1 = vld [vmem:[#allocation5 + $0x38] sm:$0xff]   ;;  %1012 = vmatprep.subr.bf16.mxu0 %v1157_v0  ;;  %v1162_v5 = vld [vmem:[#allocation5 + $0x30] sm:$0xff]   ;;  %v1165_v8 = vld [vmem:[#allocation5 + $0x68] sm:$0xff]   ;;  %vm503_vm1 = vcmask 130048   ;;  %vm921_vm2 = vcmask 80896  }
  0x36   :  { %v1159_v2 = vld [vmem:[#allocation5 + $0xf8] sm:$0xff]   ;;  %1013 = vmatpush3.bf16.msra.mxu0 %v1158_v1  ;;  %v1163_v6 = vld [vmem:[#allocation5 + $0xf0] sm:$0xff]   ;;  %v1166_v9 = vld [vmem:[#allocation5 + $0x28] sm:$0xff]  }
  0x37   :  { %v1160_v3 = vld [vmem:[#allocation5 + $0xb8] sm:$0xff]   ;;  %1034 = vmatprep.subr.bf16.mxu1 %v1159_v2  ;;  %1014 = vmatprep.subr.bf16.mxu0 %v1161_v4  ;;  %v1164_v7 = vld [vmem:[#allocation5 + $0xb0] sm:$0xff]   ;;  %v1167_v10 = vld [vmem:[#allocation5 + $0xe8] sm:$0xff]  }
  0x38   :  { %1035 = vmatpush3.bf16.msra.mxu1 %v1160_v3  ;;  %v1168_v11 = vld [vmem:[#allocation5 + $0xa8] sm:$0xff]   ;;  %v1169_v12 = vld [vmem:[#allocation5 + $0x60] sm:$0xff]   ;;  %v1173_v16 = vld [vmem:[#allocation5 + $0x58] sm:$0xff]  }
  0x39   :  { %1036 = vmatprep.subr.bf16.mxu1 %v1163_v6  ;;  %v1170_v13 = vld [vmem:[#allocation5 + $0x20] sm:$0xff]   ;;  %v1174_v17 = vld [vmem:[#allocation5 + $0x18] sm:$0xff]   ;;  %v1177_v20 = vld [vmem:[#allocation5 + $0x50] sm:$0xff]  }
  0x3a   :  { %1015 = vmatpush3.bf16.msra.mxu0 %v1162_v5  ;;  %v1171_v14 = vld [vmem:[#allocation5 + $0xe0] sm:$0xff]   ;;  %v1175_v18 = vld [vmem:[#allocation5 + $0xd8] sm:$0xff]   ;;  %v1178_v21 = vld [vmem:[#allocation5 + $0x10] sm:$0xff]  }
  0x3b   :  { %1016 = vmatprep.subr.bf16.mxu0 %v1165_v8  ;;  %v1172_v15 = vld [vmem:[#allocation5 + $0xa0] sm:$0xff]   ;;  %v1176_v19 = vld [vmem:[#allocation5 + $0x98] sm:$0xff]   ;;  %v1179_v22 = vld [vmem:[#allocation5 + $0xd0] sm:$0xff]  }
  0x3c   :  { %1037 = vmatpush3.bf16.msra.mxu1 %v1164_v7  ;;  %v1180_v23 = vld [vmem:[#allocation5 + $0x90] sm:$0xff]   ;;  %v1181_v24 = vld [vmem:[#allocation5 + $0x48] sm:$0xff]   ;;  %v1185_v28 = vld [vmem:[#allocation5 + $0x40] sm:$0xff]  }
  0x3d   :  { %1038 = vmatprep.subr.bf16.mxu1 %v1167_v10  ;;  %v1182_v25 = vld [vmem:[#allocation5 + $0x8] sm:$0xff]   ;;  %v1186_v29 = vld [vmem:[#allocation5] sm:$0xff]   ;;  %v84_v31 = vld [vmem:[#allocation2 + $0x8] sm:$0xff] }
  0x3e   :  { %1017 = vmatpush3.bf16.msra.mxu0 %v1166_v9  ;;  %v1183_v26 = vld [vmem:[#allocation5 + $0xc8] sm:$0xff]   ;;  %v1187_v30 = vld [vmem:[#allocation5 + $0xc0] sm:$0xff]   ;;  %v91_v32 = vld [vmem:[#allocation2 + $0x40] sm:$0xff] }
  0x3f   :  { %1018 = vmatprep.subr.bf16.mxu0 %v1169_v12  ;;  %v1184_v27 = vld [vmem:[#allocation5 + $0x88] sm:$0xff]   ;;  %v98_v33 = vpack.c.bf16 %v91_v32, %v84_v31  ;;  %v1188_v34 = vld [vmem:[#allocation5 + $0x80] sm:$0xff]   ;;  %v83_v35 = vld [vmem:[#allocation2] sm:$0xff] }
  0x40   :  { %1039 = vmatpush3.bf16.msra.mxu1 %v1168_v11  ;;  %v90_v36 = vld [vmem:[#allocation2 + $0x38] sm:$0xff]  ;;  %v1189_v38 = vld [vmem:[#allocation5 + $0x178] sm:$0xff]   ;;  %v93_v40 = vld [vmem:[#allocation2 + $0x50] sm:$0xff] }
  0x41   :  { %1040 = vmatprep.subr.bf16.mxu1 %v1171_v14  ;;  %539 = vmatprep.mubr.bf16.mxu0 %v98_v33  ;;  %v97_v37 = vpack.c.bf16 %v90_v36, %v83_v35  ;;  %v86_v39 = vld [vmem:[#allocation2 + $0x18] sm:$0xff]  ;;  %v1190_v42 = vld [vmem:[#allocation5 + $0x138] sm:$0xff]   ;;  %v85_v44 = vld [vmem:[#allocation2 + $0x10] sm:$0xff] }
  0x42   :  { %1019 = vmatpush3.bf16.msra.mxu0 %v1170_v13  ;;  %v100_v41 = vpack.c.bf16 %v93_v40, %v86_v39  ;;  %v92_v45 = vld [vmem:[#allocation2 + $0x48] sm:$0xff]  ;;  %v1191_v47 = vld [vmem:[#allocation5 + $0x170] sm:$0xff]   ;;  %v1193_v49 = vld [vmem:[#allocation5 + $0x168] sm:$0xff]  }
  0x43   :  { %1020 = vmatprep.subr.bf16.mxu0 %v1173_v16  ;;  %v99_v46 = vpack.c.bf16 %v92_v45, %v85_v44  ;;  %v1192_v48 = vld [vmem:[#allocation5 + $0x130] sm:$0xff]   ;;  %v1194_v50 = vld [vmem:[#allocation5 + $0x128] sm:$0xff]   ;;  %v1195_v51 = vld [vmem:[#allocation5 + $0x160] sm:$0xff]  }
  0x44   :  { %1041 = vmatpush3.bf16.msra.mxu1 %v1172_v15  ;;  %580 = vmatprep.mubr.bf16.mxu1 %v100_v41  ;;  %v1196_v52 = vld [vmem:[#allocation5 + $0x120] sm:$0xff]   ;;  %v1197_v53 = vld [vmem:[#allocation5 + $0x158] sm:$0xff]   ;;  %v1199_v55 = vld [vmem:[#allocation5 + $0x150] sm:$0xff]  }
  0x45   :  { %1042 = vmatprep.subr.bf16.mxu1 %v1175_v18  ;;  %v1198_v54 = vld [vmem:[#allocation5 + $0x118] sm:$0xff]   ;;  %v1205_v56 = vld [vmem:[#allocation5 + $0x180] sm:$0xff]   ;;  %v1200_v58 = vld [vmem:[#allocation5 + $0x110] sm:$0xff]  }
  0x46   :  { %1021 = vmatpush3.bf16.msra.mxu0 %v1174_v17  ;;  %v88_v57 = vld [vmem:[#allocation2 + $0x28] sm:$0xff]  ;;  %v1201_v59 = vld [vmem:[#allocation5 + $0x148] sm:$0xff]   ;;  %v95_v60 = vld [vmem:[#allocation2 + $0x60] sm:$0xff] }
  0x47   :  { %1022 = vmatprep.subr.bf16.mxu0 %v1177_v20  ;;  %v102_v61 = vpack.c.bf16 %v95_v60, %v88_v57  ;;  %v89_v62 = vld [vmem:[#allocation2 + $0x30] sm:$0xff]  ;;  %v96_v63 = vld [vmem:[#allocation2 + $0x68] sm:$0xff]  ;;  %v1202_v1 = vld [vmem:[#allocation5 + $0x108] sm:$0xff]  }
  0x48   :  { %1043 = vmatpush3.bf16.msra.mxu1 %v1176_v19  ;;  %v103_v0 = vpack.c.bf16 %v96_v63, %v89_v62  ;;  %v1203_v2 = vld [vmem:[#allocation5 + $0x140] sm:$0xff]   ;;  %v87_v4 = vld [vmem:[#allocation2 + $0x20] sm:$0xff]  ;;  %v94_v5 = vld [vmem:[#allocation2 + $0x58] sm:$0xff] }
  0x49   :  { %1044 = vmatprep.subr.bf16.mxu1 %v1179_v22  ;;  %v1204_v3 = vld [vmem:[#allocation5 + $0x100] sm:$0xff]   ;;  %v101_v6 = vpack.c.bf16 %v94_v5, %v87_v4  ;;  %v1207_v8 = vld [vmem:[#allocation7 + $0x30] sm:$0xff]   ;;  %v1208_v9 = vld [vmem:[#allocation7 + $0x28] sm:$0xff]  }
  0x4a   :  { %1023 = vmatpush3.bf16.msra.mxu0 %v1178_v21  ;;  %v1206_v7 = vld [vmem:[#allocation7 + $0x38] sm:$0xff]   ;;  %v1209_v10 = vld [vmem:[#allocation7 + $0x20] sm:$0xff]   ;;  %v1211_v12 = vld [vmem:[#allocation7 + $0x10] sm:$0xff]  }
  0x4b   :  { %1024 = vmatprep.subr.bf16.mxu0 %v1181_v24  ;;  %v1210_v11 = vld [vmem:[#allocation7 + $0x18] sm:$0xff]   ;;  %v1212_v13 = vld [vmem:[#allocation7 + $0x8] sm:$0xff]   ;;  %v1213_v14 = vld [vmem:[#allocation7] sm:$0xff]  }
  0x4c   :  { %1045 = vmatpush3.bf16.msra.mxu1 %v1180_v23  ;;  %v1214_v15 = vld [vmem:[#allocation8 + $0x38] sm:$0xff]   ;;  %v1215_v16 = vld [vmem:[#allocation8 + $0x30] sm:$0xff]   ;;  %v1216_v17 = vld [vmem:[#allocation8 + $0x28] sm:$0xff]  }
  0x4d   :  { %1046 = vmatprep.subr.bf16.mxu1 %v1183_v26  ;;  %v1217_v18 = vld [vmem:[#allocation8 + $0x20] sm:$0xff]   ;;  %v1218_v19 = vld [vmem:[#allocation8 + $0x18] sm:$0xff]   ;;  %v943_v32 = vld [vmem:[%s1449_s2] ss:$0 sm:$0xff] }
  0x4e   :  { %1025 = vmatpush3.bf16.msra.mxu0 %v1182_v25  ;;  %v1221_v57 = vld [vmem:[#allocation8] sm:$0xff]  }
  0x4f   :  { %1026 = vmatprep.subr.bf16.mxu0 %v1185_v28 }
  0x50   :  { %1047 = vmatpush3.bf16.msra.mxu1 %v1184_v27 }
  0x51   :  { %1048 = vmatprep.subr.bf16.mxu1 %v1187_v30 }
  0x52   :  { %1027 = vmatpush3.bf16.msra.mxu0 %v1186_v29 }
  0x53   :  { %1056 = vmatprep.subr.bf16.mxu0 %v1189_v38 }
  0x54   :  { %1049 = vmatpush3.bf16.msra.mxu1 %v1188_v34 }
  0x55   :  { %1098 = vmatprep.subr.bf16.mxu1 %v1346_v43  ;;  %540 = vmatmul.mubr.bf16.vlgmr.msra.gmra.mxu0 %v97_v37 }
  0x56   :  { %1057 = vmatpush3.bf16.msra.mxu0 %v1190_v42  ;;  %621 = vmatprep.mubr.bf16.mxu0 %v102_v61 }
  0x57   :  { %581 = vmatmul.mubr.bf16.vlgmr.msra.gmra.mxu1 %v99_v46  ;;  %1058 = vmatprep.subr.bf16.mxu0 %v1191_v47 }
  0x58   :  { %1100 = vmatprep.mubr.msk.bf16.mxu1 %vm1347_vm0, %v1346_v43  ;;  %1099 = vmatpush3.bf16.msra.mxu1 %v1205_v56  ;;  %v1220_v56 = vld [vmem:[#allocation8 + $0x8] sm:$0xff]  }
  0x59   :  { %1104 = vmatprep.subr.bf16.mxu1 %v1346_v43 }
  0x5a   :  { %1059 = vmatpush3.bf16.msra.mxu0 %v1192_v48 }
  0x5b   :  { %1060 = vmatprep.subr.bf16.mxu0 %v1193_v49 }
  0x5e   :  { %1061 = vmatpush3.bf16.msra.mxu0 %v1194_v50 }
  0x5f   :  { %1062 = vmatprep.subr.bf16.mxu0 %v1195_v51  ;;  %1101 = vmatmul.mubr.msk.bf16.vlgmr.msra.gmra.mxu1 %vm503_vm1, %v103_v0 }
  0x60   :  { %1120 = vmatprep.mubr.msk.bf16.mxu1 %vm1347_vm0, %v1346_v43  ;;  %1105 = vmatpush3.bf16.msra.mxu1 %v1206_v7 }
  0x61   :  { %1106 = vmatprep.subr.bf16.mxu1 %v1346_v43 }
  0x62   :  { %1063 = vmatpush3.bf16.msra.mxu0 %v1196_v52 }
  0x63   :  { %1064 = vmatprep.subr.bf16.mxu0 %v1197_v53 }
  0x64   :  { %1107 = vmatpush3.bf16.msra.mxu1 %v1207_v8 }
  0x65   :  { %1108 = vmatprep.subr.bf16.mxu1 %v1346_v43 }
  0x66   :  { %1065 = vmatpush3.bf16.msra.mxu0 %v1198_v54 }
  0x67   :  { %1066 = vmatprep.subr.bf16.mxu0 %v1199_v55  ;;  %v1219_v55 = vld [vmem:[#allocation8 + $0x10] sm:$0xff]  }
  0x68   :  { %1109 = vmatpush3.bf16.msra.mxu1 %v1208_v9 }
  0x69   :  { %1110 = vmatprep.subr.bf16.mxu1 %v1346_v43 }
  0x6a   :  { %1067 = vmatpush3.bf16.msra.mxu0 %v1200_v58  ;;  %v994_v58 = vld [vmem:[%s1451_s4] ss:$0 sm:$0xff]  ;;  %s1348_s4 = smov [#allocation10]  }
  0x6b   :  { %1068 = vmatprep.subr.bf16.mxu0 %v1201_v59 }
  0x6c   :  { %1111 = vmatpush3.bf16.msra.mxu1 %v1209_v10 }
  0x6d   :  { %1112 = vmatprep.subr.bf16.mxu1 %v1346_v43 }
  0x6e   :  { %1069 = vmatpush3.bf16.msra.mxu0 %v1202_v1 }
  0x6f   :  { %1070 = vmatprep.subr.bf16.mxu0 %v1203_v2 }
  0x70   :  { %1113 = vmatpush3.bf16.msra.mxu1 %v1210_v11 }
  0x71   :  { %1114 = vmatprep.subr.bf16.mxu1 %v1346_v43 }
  0x72   :  { %1071 = vmatpush3.bf16.msra.mxu0 %v1204_v3 }
  0x73   :  { %1124 = vmatprep.subr.bf16.mxu0 %v1346_v43 }
  0x74   :  { %1115 = vmatpush3.bf16.msra.mxu1 %v1211_v12 }
  0x75   :  { %622 = vmatmul.mubr.bf16.vlgmr.msra.gmra.mxu0 %v101_v6  ;;  %1116 = vmatprep.subr.bf16.mxu1 %v1346_v43 }
  0x76   :  { %1140 = vmatprep.mubr.msk.bf16.mxu0 %vm1347_vm0, %v1346_v43  ;;  %1125 = vmatpush3.bf16.msra.mxu0 %v1214_v15 }
  0x77   :  { %1126 = vmatprep.subr.bf16.mxu0 %v1346_v43 }
  0x78   :  { %1117 = vmatpush3.bf16.msra.mxu1 %v1212_v13 }
  0x79   :  { %1118 = vmatprep.subr.bf16.mxu1 %v1346_v43 }
  0x7a   :  { %1127 = vmatpush3.bf16.msra.mxu0 %v1215_v16 }
  0x7b   :  { %1128 = vmatprep.subr.bf16.mxu0 %v1346_v43 }
  0x7c   :  { %1119 = vmatpush3.bf16.msra.mxu1 %v1213_v14 }
  0x7e   :  { %1129 = vmatpush3.bf16.msra.mxu0 %v1216_v17 }
  0x7f   :  { %1130 = vmatprep.subr.bf16.mxu0 %v1346_v43 }
  0x82   :  { %1131 = vmatpush3.bf16.msra.mxu0 %v1217_v18 }
  0x83   :  { %1132 = vmatprep.subr.bf16.mxu0 %v1346_v43 }
  0x86   :  { %1133 = vmatpush3.bf16.msra.mxu0 %v1218_v19 }
  0x87   :  { %1134 = vmatprep.subr.bf16.mxu0 %v1346_v43 }
  0x8a   :  { %1135 = vmatpush3.bf16.msra.mxu0 %v1219_v55 }
  0x8b   :  { %1136 = vmatprep.subr.bf16.mxu0 %v1346_v43 }
  0x8e   :  { %1137 = vmatpush3.bf16.msra.mxu0 %v1220_v56 }
  0x8f   :  { %1138 = vmatprep.subr.bf16.mxu0 %v1346_v43  ;;  %v1003_v43 = vld [vmem:[%s1453_s6] ss:$0 sm:$0xff]  ;;  %s929_s6 = sshll.u32 %s1348_s4, 4  ;;  %s930_s6 = int_to_ptr.vmem [resolvable:$true] %s929_s6 }
  0x90   :  { %s1310_s26 = scalar_lea.vmem %s930_s6, 256  ;;  %p1315_p7 = scmp.lt.s32.totalorder %s930_s6, %s930_s6 }
  0x91   :  { %p1311_p6 = scmp.ne.s32.totalorder %s930_s6, %s1310_s26  ;;  %p1316_p8 = scmp.lt.s32.totalorder %s1310_s26, %s1310_s26 }
  0x92   :  { %1139 = vmatpush3.bf16.msra.mxu0 %v1221_v57 }
  0x93   :  { %p1317_p9 = por %p1316_p8, %p1315_p7 }
  0x95   :  { %p1318_p10 = pnand %p1317_p9, %p1311_p6 }
 0x115   :  { %v1028_v23 = vpop.f32.mrf.mxu0 }
 0x117   :  { %v1050_v20 = vpop.f32.mrf.mxu1  ;;  %v1029_v25 = vpop.f32.mrf.mxu0 }
 0x118   :  { %v1030_v31 = vadd.f32 %v1029_v25, %v1028_v23 }
 0x119   :  { %v1051_v21 = vpop.f32.mrf.mxu1  ;;  %v1031_v28 = vpop.f32.mrf.mxu0 }
 0x11a   :  { %v542_v34 = vadd.f32 %v1030_v31, %v943_v32  ;;  %v1052_v35 = vadd.f32 %v1051_v21, %v1050_v20 }
 0x11b   :  { %v1053_v22 = vpop.f32.mrf.mxu1  ;;  %v1032_v33 = vpop.f32.mrf.mxu0 }
 0x11c   :  { %v1033_v36 = vadd.f32 %v1032_v33, %v1031_v28  ;;  %v583_v39 = vadd.f32 %v1052_v35, %v542_v34 }
 0x11d   :  { %v1054_v24 = vpop.f32.mrf.mxu1 }
 0x11e   :  { %v545_v40 = vadd.f32 %v1033_v36, %v943_v32  ;;  %v1055_v41 = vadd.f32 %v1054_v24, %v1053_v22 }
 0x11f   :  { %v664_v26 = vpop.f32.mrf.mxu1 }
 0x120   :  { %v586_v47 = vadd.f32 %v1055_v41, %v545_v40 }
 0x121   :  { %v1102_v27 = vpop.f32.mrf.mxu1 }
 0x123   :  { %v667_v29 = vpop.f32.mrf.mxu1 }
 0x125   :  { %v1103_v30 = vpop.f32.mrf.mxu1 }
 0x135   :  { %v1072_v37 = vpop.f32.mrf.mxu0 }
 0x137   :  { %v1073_v38 = vpop.f32.mrf.mxu0 }
 0x138   :  { %v1074_v42 = vadd.f32 %v1073_v38, %v1072_v37 }
 0x139   :  { %v1075_v44 = vpop.f32.mrf.mxu0 }
 0x13a   :  { %v624_v45 = vadd.f32 %v1074_v42, %v583_v39 }
 0x13b   :  { %v1076_v46 = vpop.f32.mrf.mxu0 }
 0x13c   :  { %v1077_v48 = vadd.f32 %v1076_v46, %v1075_v44  ;;  %v665_v49 = vadd.f32 %v664_v26, %v624_v45 }
 0x13e   :  { %v627_v50 = vadd.f32 %v1077_v48, %v586_v47  ;;  %v671_v52 = vmax.f32 %v665_v49, 0.0 }
 0x140   :  { %v668_v51 = vadd.f32 %v667_v29, %v627_v50 }
 0x142   :  { %v672_v53 = vmax.f32 %v668_v51, 0.0 }
 0x144   :  { %v673_v54 = vpack.c.bf16 %v672_v53, %v671_v52 }
 0x146   :  { %1121 = vmatmul.mubr.bf16.vlgmr.msra.gmra.mxu1 %v673_v54 }
 0x206   :  { %v779_v59 = vpop.f32.mrf.mxu1 }
 0x207   :  { %v780_v61 = vadd.f32 %v994_v58, %v779_v59 }
 0x208   :  { %v1122_v60 = vpop.f32.mrf.mxu1 }
 0x209   :  { %v786_v1 = vmax.f32 %v780_v61, 0.0 }
 0x20a   :  { %v782_v62 = vpop.f32.mrf.mxu1 }
 0x20b   :  { %v783_v63 = vadd.f32 %v994_v58, %v782_v62 }
 0x20c   :  { %v1123_v0 = vpop.f32.mrf.mxu1 }
 0x20d   :  { %v787_v2 = vmax.f32 %v783_v63, 0.0 }
 0x20f   :  { %v788_v3 = vpack.c.bf16 %v787_v2, %v786_v1 }
 0x211   :  { %1141 = vmatmul.mubr.bf16.vlgmr.msra.gmra.mxu0 %v788_v3 }
 0x2d1   :  { %v894_v4 = vpop.f32.mrf.mxu0 }
 0x2d2   :  { %v895_v5 = vadd.f32 %v1003_v43, %v894_v4 }
 0x2d3   :  { %v1142_v6 = vpop.f32.mrf.mxu0 }
 0x2d4   :  { %901 = vmax.xlane.f32.xlu0 %v895_v5 }
 0x2d5   :  { %v897_v7 = vpop.f32.mrf.mxu0 }
 0x2d6   :  { %v898_v8 = vadd.f32 %v1003_v43, %v897_v7 }
 0x2d7   :  { %v1143_v9 = vpop.f32.mrf.mxu0 }
 0x2d8   :  { %903 = vmax.xlane.f32.xlu0 %v898_v8 }
 0x35d   :  { %v902_v10 = vpop.xlane.xlu0 %901 }
 0x35e   :  { %v905_v11 = vsub.f32 %v895_v5, %v902_v10 }
 0x360   :  { %v907_v12 = vmul.f32 1.442695, %v905_v11 }
 0x361   :  { %v904_v13 = vpop.xlane.xlu0 %903 }
 0x362   :  { %v906_v14 = vsub.f32 %v898_v8, %v904_v13  ;;  %1222 = vpow2.f32 %v907_v12 }
 0x364   :  { %v909_v15 = vmul.f32 1.442695, %v906_v14 }
 0x366   :  { %1224 = vpow2.f32 %v909_v15 }
 0x36f   :  { %v1223_v16 = vpop.eup %1222 }
 0x370   :  { %911 = vadd.xlane.f32.xlu1 %v1223_v16 }
 0x373   :  { %v1225_v17 = vpop.eup %1224 }
 0x374   :  { %913 = vadd.xlane.f32.xlu1 %v1225_v17 }
 0x3f9   :  { %v912_v18 = vpop.xlane.xlu1 %911 }
 0x3fa   :  { %1226 = vlog2.f32 %v912_v18 }
 0x3fd   :  { %v914_v19 = vpop.xlane.xlu1 %913 }
 0x3fe   :  { %1228 = vlog2.f32 %v914_v19 }
 0x407   :  { %v1227_v20 = vpop.eup %1226 }
 0x408   :  { %v916_v21 = vmul.f32 0.6931472, %v1227_v20 }
 0x40a   :  { %v919_v22 = vsub.f32 %v905_v11, %v916_v21 }
 0x40b   :  { %v1229_v23 = vpop.eup %1228 }
 0x40c   :  { %v918_v24 = vmul.f32 0.6931472, %v1229_v23  ;;  %922 = vst.msk [vmem:[#allocation10] sm:$0xff] %vm921_vm2, %v919_v22 }
 0x40e   :  { %v920_v25 = vsub.f32 %v906_v14, %v918_v24 }
 0x410   :  { %923 = vst.msk [vmem:[#allocation10 + $0x8] sm:$0xff] %vm921_vm2, %v920_v25 }
 0x411   :  { %1321 = shalt.err (!%p1318_p10)
}
 0x412   :  { %s1349_s27 = smov 128   ;;  %s1350_s28 = smov 8  }
 0x413   :  { %935 = dma.vmem_to_hbm [thread:$0]  %s930_s6, 256, %s1454_s7, [#allocation4], %s1349_s27, %s1349_s27, %s1350_s28  }
 0x414   :  { %1336 = dma.done.wait [#allocation4], 256  }
 0x415   :  { %1337 = vsyncadd [#allocation4], 4294967040 }
 0x416   :  { %939 = vsyncpa [#allocation3], 1 }
 0x417   :  { %940 = vsyncpa [#allocation6], 1 }
 0x418   :  { %941 = vsyncpa [#allocation9], 1 }
 0x419   :  { %942 = vsyncpa [#allocation4], 1 }

</bundles_post_ra>
